<compile_context>
chip_gen: v5e
topology: v5e:2x2
jax: 0.10.0
libtpu: 0.0.40
codegen_flags: <defaults>
</compile_context>

<pallas_src>
import jax
import jax.numpy as jnp
from jax.experimental import pallas as pl
from jax.experimental.pallas import tpu as pltpu


def _cdiv(a, b):
    return -(-a // b)


def _round_up(x, m):
    return _cdiv(x, m) * m


def _perceptual_attn_kernel(q_ref, mem_ref, wq_ref, bq_ref, wm_ref, v_ref,
                            w_ref, wmem_ref):
    # q_ref   : (B, Q)     batch block of queries (native dtype)
    # mem_ref : (B, M, D)  batch block of memory  (native dtype)
    # wq_ref  : (Q, H)     linear_query.weight^T  (compute dtype)
    # bq_ref  : (1, H)     linear_query.bias      (f32)
    # wm_ref  : (D, H)     linear_memory.weight^T (compute dtype)
    # v_ref   : (1, H)     v.weight as a row      (compute dtype)
    # w_ref   : (B, M)     softmax weights        (f32, lane-dense)
    # wmem_ref: (B, D)     weighted memory        (f32, lane-dense)
    B, M, D = mem_ref.shape
    H = wq_ref.shape[1]

    wq = wq_ref[...]
    wm = wm_ref[...]
    cmp_dtype = wq.dtype               # bf16 for bf16 models, else f32

    q = q_ref[...]                     # native dtype: no f32 upcast copies of
    mem = mem_ref[...]                 # the big inputs

    # Projections: dense 2-D MXU matmuls on native-dtype operands with f32
    # accumulation (B rows and B*M rows).
    q_proj = jnp.dot(q, wq, preferred_element_type=jnp.float32) + bq_ref[...]  # (B, H)
    m_proj = jnp.dot(mem.reshape(B * M, D), wm,
                     preferred_element_type=jnp.float32).reshape(B, M, H)      # (B, M, H)
    # NOTE: the (B,M,D)->(B*M,D) reshape is a free relayout only when M % 8 == 0.

    # tanh key path in the compute dtype (bf16 EUP/VPU relief on v6e/v7x); the
    # H-axis score reduction accumulates in f32 and lands directly in the
    # lane-dense (B, M) layout (avoids a degenerate N=1 MXU matmul).
    key = jnp.tanh((q_proj[:, None, :] + m_proj).astype(cmp_dtype))            # (B, M, H)
    attn = jnp.sum(key * v_ref[...], axis=-1, dtype=jnp.float32)               # (B, M)

    # Softmax over the full M axis (never tiled inside a block).
    a_max = jnp.max(attn, axis=-1, keepdims=True)
    e = jnp.exp(attn - a_max)
    # NOTE: pl.reciprocal(..., approx=True) would move this divide onto the EUP
    # but costs ~1e-4 relative error; kept exact to preserve reference parity.
    w = e / jnp.sum(e, axis=-1, keepdims=True)                                  # (B, M) f32
    w_ref[...] = w.astype(w_ref.dtype)

    # Weighted memory: sum_m w[b,m] * mem[b,m,:]. Product stays in the memory
    # dtype (halves the temporary for bf16 models), accumulation in f32.
    prod = w.astype(mem.dtype)[:, :, None] * mem                                # (B, M, D)
    wmem_ref[...] = jnp.sum(prod, axis=1, dtype=jnp.float32).astype(wmem_ref.dtype)


def _choose_block_batch(bs, Q, M, D, H, *, mem_itemsize, q_itemsize,
                        cmp_itemsize, block_batch_cap, vmem_budget_bytes):
    """VMEM-aware, sublane-aligned batch block size (ragged tail allowed)."""
    if bs <= 8:
        return bs

    # Rough per-batch-row VMEM footprint of one grid step:
    #   2x (double-buffered) memory + query input tiles,
    #   m_proj f32 + broadcast-add f32 + key (compute dtype),
    #   the (M, D) weighted-sum product, and double-buffered f32 outputs.
    per_row = (2 * M * D * mem_itemsize
               + 2 * Q * q_itemsize
               + 2 * M * H * 4 + M * H * cmp_itemsize
               + M * D * max(mem_itemsize, cmp_itemsize)
               + 2 * (M + D) * 4)
    b_fit = max(8, (vmem_budget_bytes // max(per_row, 1)) // 8 * 8)

    cap = max(8, block_batch_cap // 8 * 8)
    B = min(b_fit, cap, _round_up(bs, 8))

    # Align big tiles to the 128-row MXU granularity.
    if B >= 256:
        B = (B // 128) * 128

    # Prefer >= 4 grid steps (keeps the BlockSpec pipeline busy and balances
    # both v7x TensorCores) as long as B stays >= 128.
    quarter = _round_up(_cdiv(bs, 4), 8)
    if quarter >= 128 and quarter < B:
        B = quarter

    if B >= bs:
        return bs

    # Prefer a block size that divides bs exactly (no ragged tail); ragged
    # tails are still correct (OOB writes are masked), this just avoids a
    # partially-filled last step.
    if bs % B != 0:
        for cand in range(B, max(8, B // 2) - 1, -8):
            if bs % cand == 0:
                B = cand
                break

    # Best effort: even number of grid steps when split (v7x has 2 cores).
    nb = _cdiv(bs, B)
    if nb > 1 and nb % 2 == 1:
        for cand in range(B - 8, max(8, B // 2) - 1, -8):
            if _cdiv(bs, cand) % 2 == 0:
                B = cand
                break
    return B


def perceptual_attention(query, memory, wq_t, bq, wm_t, v_t, *,
                         block_batch=1024,
                         vmem_budget_bytes=16 * 1024 * 1024):
    """query (bs, Q), memory (bs, M, D); linear weights pre-transposed to (in, out).

    Returns (weights (bs, 1, M), weighted_memory (bs, 1, D)), matching the
    PyTorch module's perceptual-mode forward.
    """
    bs, Q = query.shape
    _, M, D = memory.shape
    H = wq_t.shape[1]

    # Compute dtype for the tanh/key path and the small parameters: bf16 when
    # the activations are bf16 (bf16-native MXU everywhere; bf16 VPU/EUP on
    # v6e/v7x), otherwise f32.
    if query.dtype == jnp.bfloat16 and memory.dtype == jnp.bfloat16:
        cmp_dtype = jnp.bfloat16
    else:
        cmp_dtype = jnp.float32
    cmp_itemsize = jnp.dtype(cmp_dtype).itemsize

    B = _choose_block_batch(
        bs, Q, M, D, H,
        mem_itemsize=memory.dtype.itemsize,
        q_itemsize=query.dtype.itemsize,
        cmp_itemsize=cmp_itemsize,
        block_batch_cap=block_batch,
        vmem_budget_bytes=vmem_budget_bytes)
    num_blocks = _cdiv(bs, B)

    # Small parameter prep (tiny arrays; negligible HBM traffic).
    # TODO(synk): padding H/D up to 128 would give full MXU tiles but inflates
    # the EUP-bound tanh work for small H; intentionally not done here.
    wq_c = wq_t.astype(cmp_dtype)                 # (Q, H)
    wm_c = wm_t.astype(cmp_dtype)                 # (D, H)
    bq2 = bq.astype(jnp.float32).reshape(1, H)    # (1, H) f32 (post-accum add)
    v_row = v_t.reshape(1, H).astype(cmp_dtype)   # v.weight^T (H,1) -> row (1,H)

    weights2d, weighted2d = pl.pallas_call(
        _perceptual_attn_kernel,
        out_shape=(
            jax.ShapeDtypeStruct((bs, M), jnp.float32),
            jax.ShapeDtypeStruct((bs, D), jnp.float32),
        ),
        grid=(num_blocks,),
        in_specs=[
            pl.BlockSpec((B, Q), lambda b: (b, 0)),        # query block
            pl.BlockSpec((B, M, D), lambda b: (b, 0, 0)),  # memory block
            pl.BlockSpec((Q, H), lambda b: (0, 0)),        # Wq^T (resident)
            pl.BlockSpec((1, H), lambda b: (0, 0)),        # bq
            pl.BlockSpec((D, H), lambda b: (0, 0)),        # Wm^T (resident)
            pl.BlockSpec((1, H), lambda b: (0, 0)),        # v row
        ],
        out_specs=(
            pl.BlockSpec((B, M), lambda b: (b, 0)),        # weights, lane-dense
            pl.BlockSpec((B, D), lambda b: (b, 0)),        # weighted memory
        ),
        compiler_params=pltpu.CompilerParams(
            dimension_semantics=("parallel",),
            vmem_limit_bytes=32 * 1024 * 1024),
    )(query, memory, wq_c, bq2, wm_c, v_row)

    weights = weights2d.reshape(bs, 1, M)
    weighted = weighted2d.reshape(bs, 1, D)
    return weights, weighted


def _reference(query, memory, wq_t, bq, wm_t, v_t):
    q_proj = query @ wq_t + bq[None, :]                       # (bs, H)
    m_proj = jnp.einsum('bmd,dh->bmh', memory, wm_t)          # (bs, M, H)
    key = jnp.tanh(q_proj[:, None, :] + m_proj)               # (bs, M, H)
    attn = jnp.einsum('bmh,h->bm', key, v_t[:, 0])            # (bs, M)
    w = jax.nn.softmax(attn, axis=-1)[:, None, :]             # (bs, 1, M)
    weighted = jnp.einsum('bom,bmd->bod', w, memory)          # (bs, 1, D)
    return w, weighted


def _check(query, memory, wq_t, bq, wm_t, v_t, **kw):
    w, wm = perceptual_attention(query, memory, wq_t, bq, wm_t, v_t, **kw)
    jax.block_until_ready((w, wm))
    w_ref, wm_ref = _reference(query, memory, wq_t, bq, wm_t, v_t)
    bs, _, M = w_ref.shape
    D = wm_ref.shape[-1]
    assert w.shape == (bs, 1, M)
    assert wm.shape == (bs, 1, D)
    assert jnp.allclose(w, w_ref, atol=1e-5, rtol=1e-5)
    assert jnp.allclose(wm, wm_ref, atol=1e-5, rtol=1e-5)


if __name__ == "__main__":
    # small shapes: bs=2, query_size=32, memory_size=32, hidden_size=32, memory_num=8
    bs, Q, D, H, M = 2, 32, 32, 32, 8

    key0 = jax.random.PRNGKey(0)
    k1, k2, k3, k4, k5, k6 = jax.random.split(key0, 6)

    query = jax.random.normal(k1, (bs, Q), dtype=jnp.float32)
    memory = jax.random.normal(k2, (bs, M, D), dtype=jnp.float32)

    # deterministic parameter init (nn.Linear shapes, stored pre-transposed as (in, out))
    wq_t = jax.random.normal(k3, (Q, H), dtype=jnp.float32) * 0.1   # linear_query.weight^T
    bq = jax.random.normal(k4, (H,), dtype=jnp.float32) * 0.1       # linear_query.bias
    wm_t = jax.random.normal(k5, (D, H), dtype=jnp.float32) * 0.1   # linear_memory.weight^T
    v_t = jax.random.normal(k6, (H, 1), dtype=jnp.float32) * 0.1    # v.weight^T

    # Case 1: single block (B == bs).
    _check(query, memory, wq_t, bq, wm_t, v_t)

    # Case 2: multi-block grid with an exactly-dividing block size (no padding).
    bs2 = 40
    k7, k8 = jax.random.split(jax.random.PRNGKey(1), 2)
    query2 = jax.random.normal(k7, (bs2, Q), dtype=jnp.float32)
    memory2 = jax.random.normal(k8, (bs2, M, D), dtype=jnp.float32)
    _check(query2, memory2, wq_t, bq, wm_t, v_t, block_batch=8)

    # Case 3: ragged tail (bs not a multiple of B) handled via a partial last
    # block — no wrapper-side jnp.pad of the large memory tensor.
    bs3 = 36
    k9, k10 = jax.random.split(jax.random.PRNGKey(2), 2)
    query3 = jax.random.normal(k9, (bs3, Q), dtype=jnp.float32)
    memory3 = jax.random.normal(k10, (bs3, M, D), dtype=jnp.float32)
    _check(query3, memory3, wq_t, bq, wm_t, v_t, block_batch=16)

    print("KERNEL_OK")
</pallas_src>

<mosaic_0001>
module attributes {stable_mosaic.version = 11 : i64} {
  func.func @_perceptual_attn_kernel(%arg0: i32, %arg1: memref<2x32xf32, #tpu.memory_space<vmem>>, %arg2: memref<2x8x32xf32, #tpu.memory_space<vmem>>, %arg3: memref<32x32xf32, #tpu.memory_space<vmem>>, %arg4: memref<1x32xf32, #tpu.memory_space<vmem>>, %arg5: memref<32x32xf32, #tpu.memory_space<vmem>>, %arg6: memref<1x32xf32, #tpu.memory_space<vmem>>, %arg7: memref<2x8xf32, #tpu.memory_space<vmem>>, %arg8: memref<2x32xf32, #tpu.memory_space<vmem>>) attributes {dimension_semantics = [#tpu.dimension_semantics<parallel>], iteration_bounds = array<i64: 1>, scalar_prefetch = 0 : i64, scratch_operands = 0 : i64, tpu.core_type = #tpu.core_type<tc>, window_params = [{transform_indices = @transform_0, window_bounds = array<i64: 2, 32>}, {transform_indices = @transform_1, window_bounds = array<i64: 2, 8, 32>}, {pipeline_mode = #tpu.pipeline_mode<synchronous>, transform_indices = @transform_2, window_bounds = array<i64: 32, 32>}, {pipeline_mode = #tpu.pipeline_mode<synchronous>, transform_indices = @transform_3, window_bounds = array<i64: 1, 32>}, {pipeline_mode = #tpu.pipeline_mode<synchronous>, transform_indices = @transform_4, window_bounds = array<i64: 32, 32>}, {pipeline_mode = #tpu.pipeline_mode<synchronous>, transform_indices = @transform_5, window_bounds = array<i64: 1, 32>}, {transform_indices = @transform_6, window_bounds = array<i64: 2, 8>}, {transform_indices = @transform_7, window_bounds = array<i64: 2, 32>}]} {
    %c0 = arith.constant 0 : index
    %c0_0 = arith.constant 0 : index
    %0 = vector.load %arg3[%c0, %c0_0] : memref<32x32xf32, #tpu.memory_space<vmem>>, vector<32x32xf32>
    %c0_1 = arith.constant 0 : index
    %c0_2 = arith.constant 0 : index
    %1 = vector.load %arg5[%c0_1, %c0_2] : memref<32x32xf32, #tpu.memory_space<vmem>>, vector<32x32xf32>
    %c0_3 = arith.constant 0 : index
    %c0_4 = arith.constant 0 : index
    %2 = vector.load %arg1[%c0_3, %c0_4] : memref<2x32xf32, #tpu.memory_space<vmem>>, vector<2x32xf32>
    %c0_5 = arith.constant 0 : index
    %c0_6 = arith.constant 0 : index
    %c0_7 = arith.constant 0 : index
    %3 = vector.load %arg2[%c0_5, %c0_6, %c0_7] : memref<2x8x32xf32, #tpu.memory_space<vmem>>, vector<2x8x32xf32>
    %cst = arith.constant dense<0.000000e+00> : vector<2x32xf32>
    %4 = tpu.matmul %2, %0, %cst {dimension_numbers = #tpu.dot_dimension_numbers<[1], [0], [0], [1], [0, 0, 1, 1], [], []>} : vector<2x32xf32>, vector<32x32xf32>, vector<2x32xf32> -> vector<2x32xf32>
    %c0_8 = arith.constant 0 : index
    %c0_9 = arith.constant 0 : index
    %5 = vector.load %arg4[%c0_8, %c0_9] : memref<1x32xf32, #tpu.memory_space<vmem>>, vector<1x32xf32>
    %6 = vector.broadcast %5 : vector<1x32xf32> to vector<2x32xf32>
    %7 = arith.addf %4, %6 : vector<2x32xf32>
    %8 = vector.shape_cast %3 : vector<2x8x32xf32> to vector<16x32xf32>
    %cst_10 = arith.constant dense<0.000000e+00> : vector<16x32xf32>
    %9 = tpu.matmul %8, %1, %cst_10 {dimension_numbers = #tpu.dot_dimension_numbers<[1], [0], [0], [1], [0, 0, 1, 1], [], []>} : vector<16x32xf32>, vector<32x32xf32>, vector<16x32xf32> -> vector<16x32xf32>
    %10 = vector.shape_cast %9 : vector<16x32xf32> to vector<2x8x32xf32>
    %11 = vector.shape_cast %7 : vector<2x32xf32> to vector<2x1x32xf32>
    %12 = vector.broadcast %11 : vector<2x1x32xf32> to vector<2x8x32xf32>
    %13 = arith.addf %12, %10 : vector<2x8x32xf32>
    %14 = math.tanh %13 : vector<2x8x32xf32>
    %c0_11 = arith.constant 0 : index
    %c0_12 = arith.constant 0 : index
    %15 = vector.load %arg6[%c0_11, %c0_12] : memref<1x32xf32, #tpu.memory_space<vmem>>, vector<1x32xf32>
    %16 = vector.shape_cast %15 : vector<1x32xf32> to vector<1x1x32xf32>
    %17 = vector.broadcast %16 : vector<1x1x32xf32> to vector<2x8x32xf32>
    %18 = arith.mulf %14, %17 : vector<2x8x32xf32>
    %cst_13 = arith.constant dense<0.000000e+00> : vector<2x8xf32>
    %19 = vector.multi_reduction <add>, %18, %cst_13 [2] : vector<2x8x32xf32> to vector<2x8xf32>
    %cst_14 = arith.constant dense<0xFF800000> : vector<2xf32>
    %20 = vector.multi_reduction <maximumf>, %19, %cst_14 [1] : vector<2x8xf32> to vector<2xf32>
    %21 = vector.shape_cast %20 : vector<2xf32> to vector<2x1xf32>
    %22 = vector.broadcast %21 : vector<2x1xf32> to vector<2x8xf32>
    %23 = arith.subf %19, %22 : vector<2x8xf32>
    %24 = math.exp %23 : vector<2x8xf32>
    %cst_15 = arith.constant dense<0.000000e+00> : vector<2xf32>
    %25 = vector.multi_reduction <add>, %24, %cst_15 [1] : vector<2x8xf32> to vector<2xf32>
    %26 = vector.shape_cast %25 : vector<2xf32> to vector<2x1xf32>
    %27 = vector.broadcast %26 : vector<2x1xf32> to vector<2x8xf32>
    %28 = arith.divf %24, %27 : vector<2x8xf32>
    %c0_16 = arith.constant 0 : index
    %c0_17 = arith.constant 0 : index
    %29 = vector.load %arg7[%c0_16, %c0_17] : memref<2x8xf32, #tpu.memory_space<vmem>>, vector<2x8xf32>
    tpu.vector_store %arg7[%c0_16, %c0_17], %28 {strides = array<i32>} : memref<2x8xf32, #tpu.memory_space<vmem>>, vector<2x8xf32>,
    %30 = vector.shape_cast %28 : vector<2x8xf32> to vector<2x8x1xf32>
    %31 = vector.broadcast %30 : vector<2x8x1xf32> to vector<2x8x32xf32>
    %32 = arith.mulf %31, %3 : vector<2x8x32xf32>
    %cst_18 = arith.constant dense<0.000000e+00> : vector<2x32xf32>
    %33 = vector.multi_reduction <add>, %32, %cst_18 [1] : vector<2x8x32xf32> to vector<2x32xf32>
    %c0_19 = arith.constant 0 : index
    %c0_20 = arith.constant 0 : index
    %34 = vector.load %arg8[%c0_19, %c0_20] : memref<2x32xf32, #tpu.memory_space<vmem>>, vector<2x32xf32>
    tpu.vector_store %arg8[%c0_19, %c0_20], %33 {strides = array<i32>} : memref<2x32xf32, #tpu.memory_space<vmem>>, vector<2x32xf32>,
    return
  }
  func.func @transform_0(%arg0: i32) -> (i32, i32) {
    %c0_i32 = arith.constant 0 : i32
    %c0_i32_0 = arith.constant 0 : i32
    return %arg0, %c0_i32 : i32, i32
  }
  func.func @transform_1(%arg0: i32) -> (i32, i32, i32) {
    %c0_i32 = arith.constant 0 : i32
    %c0_i32_0 = arith.constant 0 : i32
    %c0_i32_1 = arith.constant 0 : i32
    return %arg0, %c0_i32, %c0_i32_0 : i32, i32, i32
  }
  func.func @transform_2(%arg0: i32) -> (i32, i32) {
    %c0_i32 = arith.constant 0 : i32
    %c0_i32_0 = arith.constant 0 : i32
    %c0_i32_1 = arith.constant 0 : i32
    return %c0_i32, %c0_i32_0 : i32, i32
  }
  func.func @transform_3(%arg0: i32) -> (i32, i32) {
    %c0_i32 = arith.constant 0 : i32
    %c0_i32_0 = arith.constant 0 : i32
    %c0_i32_1 = arith.constant 0 : i32
    return %c0_i32, %c0_i32_0 : i32, i32
  }
  func.func @transform_4(%arg0: i32) -> (i32, i32) {
    %c0_i32 = arith.constant 0 : i32
    %c0_i32_0 = arith.constant 0 : i32
    %c0_i32_1 = arith.constant 0 : i32
    return %c0_i32, %c0_i32_0 : i32, i32
  }
  func.func @transform_5(%arg0: i32) -> (i32, i32) {
    %c0_i32 = arith.constant 0 : i32
    %c0_i32_0 = arith.constant 0 : i32
    %c0_i32_1 = arith.constant 0 : i32
    return %c0_i32, %c0_i32_0 : i32, i32
  }
  func.func @transform_6(%arg0: i32) -> (i32, i32) {
    %c0_i32 = arith.constant 0 : i32
    %c0_i32_0 = arith.constant 0 : i32
    return %arg0, %c0_i32 : i32, i32
  }
  func.func @transform_7(%arg0: i32) -> (i32, i32) {
    %c0_i32 = arith.constant 0 : i32
    %c0_i32_0 = arith.constant 0 : i32
    return %arg0, %c0_i32 : i32, i32
  }
}

</mosaic_0001>

<bundles_post_ra>
// kernel: tpu_custom_call.1
= control target key start
LH: loop header
LB: loop body
LE: loop exit
PB: predicated region body
PF: predicated region fallthrough
CT: control target
= control target key end

     0   :  { %13 = vsyncpa [#allocation3], 0  ;;  %s614_s0 = inlined_call_operand.hbm [shape: f32[2,32], index: 0, kind: input, shape index: {}]   ;;  %s615_s1 = inlined_call_operand.hbm [shape: f32[2,8,32], index: 1, kind: input, shape index: {}]   ;;  %s616_s2 = inlined_call_operand.hbm [shape: f32[32,32], index: 2, kind: input, shape index: {}]   ;;  %s617_s3 = inlined_call_operand.vmem [shape: f32[1,32], index: 3, kind: input, shape index: {}]   ;;  %s618_s4 = inlined_call_operand.hbm [shape: f32[32,32], index: 4, kind: input, shape index: {}]   ;;  %s619_s5 = inlined_call_operand.vmem [shape: f32[1,32], index: 5, kind: input, shape index: {}]   ;;  %s620_s6 = inlined_call_operand.hbm [shape: f32[2,8], index: 6, kind: output, shape index: {0}]   ;;  %s621_s7 = inlined_call_operand.hbm [shape: f32[2,32], index: 7, kind: output, shape index: {1}]  }
   0x1   :  { %14 = vsyncpa [#allocation6], 0 }
   0x2   :  { %15 = vsyncpa [#allocation9], 0 }
   0x3   :  { %16 = vsyncpa [#allocation4], 0  ;;  %s33_s26 = sshll.u32 %s615_s1, 4  ;;  %s34_s26 = int_to_ptr.hbm [resolvable:$true] %s33_s26 }
   0x4   :  { %17 = vsyncpa [#allocation12], 0  ;;  %s511_s27 = smov [#allocation5]   ;;  %s23_s8 = sshll.u32 %s614_s0, 4  ;;  %s24_s8 = int_to_ptr.hbm [resolvable:$true] %s23_s8 }
   0x5   :  { %s35_s28 = sshll.u32 %s511_s27, 4  ;;  %s512_s9 = smov 128   ;;  %s36_s28 = int_to_ptr.vmem [resolvable:$true] %s35_s28 }
   0x6   :  { %s513_s10 = smov 8   ;;  %s514_s11 = smov [#allocation2]  }
   0x7   :  { %41 = dma.hbm_to_vmem [thread:$0]  %s34_s26, 256, %s36_s28, [#allocation6], %s512_s9, %s512_s9, %s513_s10  }
   0x8   :  { %s25_s12 = sshll.u32 %s514_s11, 4  ;;  %s46_s15 = sshll.u32 %s616_s2, 4  ;;  %s26_s12 = int_to_ptr.vmem [resolvable:$true] %s25_s12  ;;  %s47_s15 = int_to_ptr.hbm [resolvable:$true] %s46_s15 }
   0x9   :  { %28 = dma.hbm_to_vmem [thread:$0]  %s24_s8, 32, %s26_s12, [#allocation3]  }
   0xa   :  { %s61_s17 = sshll.u32 %s618_s4, 4  ;;  %s515_s18 = smov [#allocation7]   ;;  %s62_s17 = int_to_ptr.hbm [resolvable:$true] %s61_s17 }
   0xb   :  { %s48_s19 = sshll.u32 %s515_s18, 4  ;;  %s516_s0 = smov [#allocation8]   ;;  %s49_s19 = int_to_ptr.vmem [resolvable:$true] %s48_s19 }
   0xc   :  { %54 = dma.hbm_to_vmem [thread:$0]  %s47_s15, 512, %s49_s19, [#allocation6], %s512_s9, %s512_s9, %s513_s10  }
   0xd   :  { %s63_s20 = sshll.u32 %s516_s0, 4  ;;  %s64_s20 = int_to_ptr.vmem [resolvable:$true] %s63_s20 }
   0xe   :  { %69 = dma.hbm_to_vmem [thread:$0]  %s62_s17, 512, %s64_s20, [#allocation9], %s512_s9, %s512_s9, %s513_s10  }
   0xf   :  { %501 = dma.done.wait [#allocation3], 32  }
  0x10   :  { %502 = vsyncadd [#allocation3], 4294967264 }
  0x11   :  { %503 = dma.done.wait [#allocation6], 768  }
  0x12   :  { %504 = vsyncadd [#allocation6], 4294966528 }
  0x13   :  { %505 = dma.done.wait [#allocation9], 512  }
  0x14   :  { %506 = vsyncadd [#allocation9], 4294966784  ;;  %v91_v0 = vld [vmem:[#allocation7 + $0x18] sm:$0xff]  ;;  %v90_v2 = vld [vmem:[#allocation7 + $0x10] sm:$0xff]  ;;  %vm103_vm0 = vcmask 261120   ;;  %v180_v29 = vlaneseq  ;;  %vm184_vm1 = vcmask 1041409  }
  0x15   :  { %v95_v1 = vld [vmem:[#allocation8 + $0x18] sm:$0xff]  ;;  %119 = vmatpush.msra.mxu0 %v91_v0  ;;  %v94_v3 = vld [vmem:[#allocation8 + $0x10] sm:$0xff]  ;;  %v89_v4 = vld [vmem:[#allocation7 + $0x8] sm:$0xff]  ;;  %vm187_vm2 = vcmask 58368   ;;  %v517_v36 = vmov 0   ;;  %s296_s25 = sshll.u32 %s620_s6, 4  ;;  %s297_s25 = int_to_ptr.hbm [resolvable:$true] %s296_s25 }
  0x16   :  { %327 = vmatpush.msra.mxu2 %v95_v1  ;;  %145 = vmatpush.msra.mxu1 %v95_v1  ;;  %v93_v5 = vld [vmem:[#allocation8 + $0x8] sm:$0xff]  ;;  %v88_v6 = vld [vmem:[#allocation7] sm:$0xff]  ;;  %v572_v9 = vld [vmem:[#allocation5 + $0x8] sm:$0xff]  ;;  %v589_v30 = vand.u32 127, %v180_v29  ;;  %s519_s6 = smov [#allocation11]   ;;  %s307_s29 = sshll.u32 %s621_s7, 4  ;;  %s308_s29 = int_to_ptr.hbm [resolvable:$true] %s307_s29 }
  0x17   :  { %120 = vmatpush.msra.mxu0 %v90_v2  ;;  %v92_v7 = vld [vmem:[#allocation8] sm:$0xff]  ;;  %v96_v8 = vld [vmem:[#allocation2] sm:$0x3]  ;;  %v574_v10 = vld [vmem:[#allocation5] sm:$0xff]  ;;  %341 = vset.pattern.permute.xlu2 %v517_v36  ;;  %s305_s26 = sshll.u32 %s519_s6, 4  ;;  %vm287_vm11 = vcmask 254976   ;;  %s306_s26 = int_to_ptr.vmem [resolvable:$true] %s305_s26 }
  0x18   :  { %328 = vmatpush.msra.mxu2 %v94_v3  ;;  %146 = vmatpush.msra.mxu1 %v94_v3  ;;  %v343_v11 = vld [vmem:[%s617_s3] ss:$0 sm:$0xff]  ;;  %s518_s3 = smov [#allocation10]  }
  0x19   :  { %121 = vmatpush.msra.mxu0 %v89_v4  ;;  %v344_v21 = vld [vmem:[%s619_s5] ss:$0 sm:$0xff]  ;;  %340 = vset.pattern.permute.xlu1 %v517_v36  ;;  %s294_s5 = sshll.u32 %s518_s3, 4  ;;  %s295_s5 = int_to_ptr.vmem [resolvable:$true] %s294_s5 }
  0x1a   :  { %329 = vmatpush.msra.mxu2 %v93_v5  ;;  %147 = vmatpush.msra.mxu1 %v93_v5 }
  0x1b   :  { %122 = vmatpush.msra.mxu0 %v88_v6  ;;  %342 = vset.pattern.permute.xlu0 %v517_v36 }
  0x1c   :  { %330 = vmatpush.msra.mxu2 %v92_v7  ;;  %324 = vmatmul.msk.f32.vlgmr.msra.gmra.mxu0 %vm103_vm0, %v96_v8 }
  0x1d   :  { %326 = vmatmul.msk.f32.vlgmr.msra.gmra.mxu2 %vm103_vm0, %v572_v9  ;;  %148 = vmatpush.msra.mxu1 %v92_v7 }
  0x1e   :  { %325 = vmatmul.msk.f32.vlgmr.msra.gmra.mxu1 %vm103_vm0, %v574_v10 }
  0x99   :  { %v124_v12 = vpop.f32.mrf.mxu0 }
  0x9a   :  { %v125_v13 = vadd.f32 %v343_v11, %v124_v12 }
  0x9b   :  { %v150_v14 = vpop.f32.mrf.mxu1 }
  0x9c   :  { %v157_v15 = vrot.slane %v125_v13, 1  ;;  %v158_v16 = vperm.slane %v125_v13, 0 }
  0x9e   :  { %v162_v17 = vadd.f32 %v158_v16, %v150_v14  ;;  %v159_v18 = vperm.slane %v157_v15, 0 }
  0xa0   :  { %v153_v19 = vpop.f32.mrf.mxu2  ;;  %345 = vtanh.f32 %v162_v17 }
  0xa1   :  { %v163_v20 = vadd.f32 %v159_v18, %v153_v19 }
  0xa3   :  { %347 = vtanh.f32 %v163_v20 }
  0xa6   :  { %v346_v22 = vpop.eup %345 }
  0xa7   :  { %v170_v23 = vmul.f32 %v346_v22, %v344_v21 }
  0xa9   :  { %v172_v24 = vsel %vm103_vm0, %v170_v23, 0.0  ;;  %v348_v25 = vpop.eup %347 }
  0xaa   :  { %173 = vadd.xlane.f32.xlu0 %v172_v24  ;;  %v171_v26 = vmul.f32 %v348_v25, %v344_v21 }
  0xac   :  { %v175_v27 = vsel %vm103_vm0, %v171_v26, 0.0 }
  0xb2   :  { %176 = vadd.xlane.f32.xlu0 %v175_v27 }
 0x11d   :  { %v174_v28 = vpop.xlane.xlu0 %173 }
 0x11e   :  { %v182_v32 = vperm.slane %v174_v28, %v589_v30 }
 0x125   :  { %v177_v31 = vpop.xlane.xlu0 %176 }
 0x126   :  { %v183_v33 = vperm.slane %v177_v31, %v589_v30 }
 0x128   :  { %v185_v34 = vsel %vm184_vm1, %v183_v33, %v182_v32 }
 0x129   :  { %v188_v35 = vsel %vm187_vm2, %v185_v34, -inf }
 0x12a   :  { %189 = vmax.xlane.f32.xlu1 %v188_v35 }
 0x19d   :  { %v190_v37 = vpop.xlane.xlu1 %189 }
 0x19e   :  { %v192_v38 = vperm.slane %v190_v37, 0  ;;  %v193_v39 = vperm.slane %v190_v37, 1 }
 0x1a0   :  { %v196_v40 = vsub.f32 %v174_v28, %v192_v38  ;;  %v197_v41 = vsub.f32 %v177_v31, %v193_v39 }
 0x1a2   :  { %v198_v42 = vmul.f32 1.442695, %v196_v40  ;;  %v200_v43 = vmul.f32 1.442695, %v197_v41 }
 0x1a4   :  { %349 = vpow2.f32 %v198_v42 }
 0x1a5   :  { %351 = vpow2.f32 %v200_v43 }
 0x1aa   :  { %v350_v44 = vpop.eup %349 }
 0x1ab   :  { %v352_v45 = vpop.eup %351  ;;  %205 = vperm.xlu1 %340, %v350_v44  }
 0x1ac   :  { %208 = vperm.xlu2 %341, %v352_v45  }
 0x206   :  { %v209_v46 = vpop.permute.xlu2 %208 }
 0x207   :  { %v211_v48 = vperm.slane %v209_v46, %v589_v30 }
 0x21d   :  { %v206_v47 = vpop.permute.xlu1 %205 }
 0x21e   :  { %v210_v49 = vperm.slane %v206_v47, %v589_v30 }
 0x220   :  { %v212_v50 = vsel %vm184_vm1, %v211_v48, %v210_v49 }
 0x221   :  { %v214_v51 = vsel %vm187_vm2, %v212_v50, 0.0 }
 0x222   :  { %215 = vadd.xlane.f32.xlu2 %v214_v51 }
 0x295   :  { %v216_v52 = vpop.xlane.xlu2 %215 }
 0x296   :  { %v218_v53 = vperm.slane %v216_v52, 0  ;;  %v219_v54 = vperm.slane %v216_v52, 1 }
 0x298   :  { %353 = vrcp.f32 %v218_v53  ;;  %v233_v61 = vand.u32 2147483648, %v218_v53  ;;  %v248_v62 = vand.u32 2147483648, %v219_v54  ;;  %v231_v0 = vand.u32 2147483647, %v218_v53 }
 0x299   :  { %355 = vrcp.f32 %v219_v54  ;;  %v246_v2 = vand.u32 2147483647, %v219_v54  ;;  %vm227_vm5 = vweird.f32 %v218_v53  ;;  %vm242_vm6 = vweird.f32 %v219_v54 }
 0x29a   :  { %v234_v5 = vor.u32 1.1754944e-38, %v233_v61  ;;  %v249_v6 = vor.u32 1.1754944e-38, %v248_v62  ;;  %vm232_vm9 = vcmp.eq.f32.partialorder %v231_v0, 8.507059e+37 }
 0x29b   :  { %vm247_vm10 = vcmp.eq.f32.partialorder %v246_v2, 8.507059e+37 }
 0x29e   :  { %v354_v55 = vpop.eup %353 }
 0x29f   :  { %v356_v56 = vpop.eup %355  ;;  %v223_v57 = vmul.f32 %v354_v55, %v218_v53  ;;  %vm228_vm3 = vweird.f32 %v354_v55 }
 0x2a0   :  { %v238_v58 = vmul.f32 %v356_v56, %v219_v54  ;;  %vm243_vm4 = vweird.f32 %v356_v56  ;;  %vm229_vm7 = vmor %vm227_vm5, %vm228_vm3 }
 0x2a1   :  { %v224_v59 = vsub.f32 1.0, %v223_v57  ;;  %vm244_vm8 = vmor %vm242_vm6, %vm243_vm4 }
 0x2a2   :  { %v239_v60 = vsub.f32 1.0, %v238_v58 }
 0x2a3   :  { %v225_v63 = vmul.f32 %v354_v55, %v224_v59 }
 0x2a4   :  { %v240_v1 = vmul.f32 %v356_v56, %v239_v60 }
 0x2a5   :  { %v226_v3 = vadd.f32 %v354_v55, %v225_v63 }
 0x2a6   :  { %v241_v4 = vadd.f32 %v356_v56, %v240_v1 }
 0x2a7   :  { %v230_v7 = vsel %vm229_vm7, %v354_v55, %v226_v3 }
 0x2a8   :  { %v245_v8 = vsel %vm244_vm8, %v356_v56, %v241_v4  ;;  %v235_v11 = vsel %vm232_vm9, %v234_v5, %v230_v7 }
 0x2a9   :  { %v250_v12 = vsel %vm247_vm10, %v249_v6, %v245_v8  ;;  %v236_v13 = vmul.f32 %v350_v44, %v235_v11 }
 0x2aa   :  { %v251_v14 = vmul.f32 %v352_v45, %v250_v12 }
 0x2ab   :  { %255 = vperm.xlu0 %342, %v236_v13  }
 0x2ac   :  { %258 = vperm.xlu1 %340, %v251_v14  }
 0x31d   :  { %v256_v15 = vpop.permute.xlu0 %255 }
 0x31e   :  { %v259_v16 = vpop.permute.xlu1 %258  ;;  %v260_v17 = vperm.slane %v256_v15, %v589_v30  ;;  %v267_v18 = vmul.f32 %v256_v15, %v574_v10 }
 0x31f   :  { %v261_v19 = vperm.slane %v259_v16, %v589_v30  ;;  %v268_v20 = vmul.f32 %v259_v16, %v572_v9 }
 0x320   :  { %v269_v21 = vsel %vm103_vm0, %v267_v18, 0.0 }
 0x321   :  { %v276_v22 = vsel %vm103_vm0, %v268_v20, 0.0  ;;  %v262_v23 = vsel %vm184_vm1, %v261_v19, %v260_v17  ;;  %v270_v24 = vrot.slane %v269_v21, 4 }
 0x322   :  { %v277_v25 = vrot.slane %v276_v22, 4  ;;  %264 = vst.msk [vmem:[#allocation10] sm:$0x3] %vm187_vm2, %v262_v23 }
 0x323   :  { %v271_v26 = vadd.f32 %v270_v24, %v269_v21  ;;  %299 = dma.vmem_to_hbm [thread:$0]  %s295_s5, 32, %s297_s25, [#allocation4]  }
 0x324   :  { %v278_v27 = vadd.f32 %v277_v25, %v276_v22 }
 0x325   :  { %v272_v10 = vrot.slane %v271_v26, 2 }
 0x326   :  { %v279_v28 = vrot.slane %v278_v27, 2 }
 0x327   :  { %v273_v29 = vadd.f32 %v272_v10, %v271_v26 }
 0x328   :  { %v280_v30 = vadd.f32 %v279_v28, %v278_v27 }
 0x329   :  { %v274_v9 = vrot.slane %v273_v29, 1 }
 0x32a   :  { %v281_v31 = vrot.slane %v280_v30, 1 }
 0x32b   :  { %v275_v32 = vadd.f32 %v274_v9, %v273_v29 }
 0x32c   :  { %v282_v33 = vadd.f32 %v281_v31, %v280_v30 }
 0x32e   :  { %v285_v34 = vsel %vm184_vm1, %v282_v33, %v275_v32 }
 0x32f   :  { %288 = vst.msk [vmem:[#allocation11] sm:$0x3] %vm287_vm11, %v285_v34 }
 0x330   :  { %310 = dma.vmem_to_hbm [thread:$0]  %s306_s26, 32, %s308_s29, [#allocation12]  }
 0x331   :  { %507 = dma.done.wait [#allocation4], 32  }
 0x332   :  { %508 = vsyncadd [#allocation4], 4294967264 }
 0x333   :  { %509 = dma.done.wait [#allocation12], 32  }
 0x334   :  { %510 = vsyncadd [#allocation12], 4294967264 }
 0x335   :  { %319 = vsyncpa [#allocation3], 1 }
 0x336   :  { %320 = vsyncpa [#allocation6], 1 }
 0x337   :  { %321 = vsyncpa [#allocation9], 1 }
 0x338   :  { %322 = vsyncpa [#allocation4], 1 }
 0x339   :  { %323 = vsyncpa [#allocation12], 1 }

</bundles_post_ra>
